<compile_context>
chip_gen: v6e
topology: v6e:2x2x1
jax: 0.10.0
libtpu: 0.0.40
codegen_flags: <defaults>
</compile_context>

<pallas_src>
import functools
import math

import jax
import jax.numpy as jnp
from jax.experimental import pallas as pl
from jax.experimental.pallas import tpu as pltpu


def _gelu_exact(x):
    # matches torch.nn.GELU() (approximate='none'): 0.5*x*(1+erf(x/sqrt(2)))
    return 0.5 * x * (1.0 + jax.lax.erf(x * (1.0 / math.sqrt(2.0))))


def _sae_kernel(x_ref, ew1_ref, eb1_ref, ew2_ref, eb2_ref,
                dw1_ref, db1_ref, dw2_ref, db2_ref, o_ref, *, k, n_sub):
    f32 = jnp.float32
    cdt = x_ref.dtype                        # MXU operand dtype (bf16 by default)
    rows = x_ref.shape[0] // n_sub

    # Weights/biases have constant index maps -> VMEM-resident across the grid;
    # load (hoist) once per kernel invocation.
    ew1 = ew1_ref[...]; eb1 = eb1_ref[...]   # (C, D), (1, D)
    ew2 = ew2_ref[...]; eb2 = eb2_ref[...]   # (D, N), (1, N)
    dw1 = dw1_ref[...]; db1 = db1_ref[...]   # (N, D), (1, D)
    dw2 = dw2_ref[...]; db2 = db2_ref[...]   # (D, C), (1, C)

    # Process the batch tile in n_sub independent sub-tiles: the serial top-k
    # (XLU cross-lane maxes) of one sub-tile can overlap the encoder/decoder
    # matmuls (MXU) of the other in the VLIW schedule.
    for h in range(n_sub):
        sl = pl.ds(h * rows, rows)

        # ---- encoder MLP; (x - decoder_b2) is folded into eb1 by the wrapper ----
        hid = jnp.dot(x_ref[sl, :], ew1, preferred_element_type=f32) + eb1
        hid = _gelu_exact(hid)
        s = jnp.dot(hid.astype(cdt), ew2, preferred_element_type=f32) + eb2

        # ---- top-k mask + ReLU (fused) ----
        n_feat = s.shape[-1]
        if k <= 0:
            z = jnp.zeros_like(s)
        elif k >= n_feat:
            z = jnp.maximum(s, 0.0)
        else:
            # k-th largest per row via k iterated row-max reductions (k small &
            # static).  Note: ties exactly at the threshold keep >k features
            # (torch.topk keeps exactly k) -- exact for continuous activations.
            work = s
            for _ in range(k):
                thr = jnp.max(work, axis=-1, keepdims=True)
                work = jnp.where(work >= thr, -jnp.inf, work)
            z = jnp.where(s >= thr, jnp.maximum(s, 0.0), 0.0)

        # TODO(synk): act_sum / act_ema running-buffer updates are stateful
        # training-time side effects (torch.no_grad) and do not affect the
        # returned reconstruction; they are not reproduced here.

        # ---- decoder MLP ----
        d = jnp.dot(z.astype(cdt), dw1, preferred_element_type=f32) + db1
        d = _gelu_exact(d)
        out = jnp.dot(d.astype(cdt), dw2, preferred_element_type=f32) + db2
        o_ref[sl, :] = out.astype(o_ref.dtype)


def _estimate_vmem_bytes(tb, C, D, N, cbytes):
    """Rough per-step VMEM estimate: resident weights + double-buffered x/out
    tiles + live f32 intermediates (s/work/z dominate at (tb, N))."""
    weights = (C * D + D * N + N * D + D * C) * cbytes
    biases = (2 * D + N + 2 * C) * 4
    io = 2 * (tb * C * cbytes) + 2 * (tb * C * 4)
    live = 3 * tb * N * 4 + 2 * tb * D * 4
    return weights + biases + io + live


def topk_mlp_sae(x, params, k, *, block_b=None, compute_dtype=jnp.bfloat16,
                 vmem_budget_bytes=40 * 1024 * 1024):
    f32 = jnp.float32
    B, C = x.shape
    D = params["encoder_w1"].shape[0]        # dense_hidden_features
    N = params["encoder_w2"].shape[0]        # hidden_features
    cbytes = jnp.dtype(compute_dtype).itemsize

    # ---- one-time host/wrapper prep (outside the kernel) ----
    # Pre-transpose to [in_features, out_features] so in-kernel matmuls are
    # plain A @ B; cast MXU operands to bf16 (f32 accumulation on the MXU).
    ew1t = params["encoder_w1"].T.astype(compute_dtype)      # (C, D)
    ew2t = params["encoder_w2"].T.astype(compute_dtype)      # (D, N)
    dw1t = params["decoder_w1"].T.astype(compute_dtype)      # (N, D)
    dw2t = params["decoder_w2"].T.astype(compute_dtype)      # (D, C)
    db2 = params["decoder_b2"].reshape(1, C).astype(f32)
    # Fold (x - decoder_b2) @ encoder_w1.T into the encoder bias (exact algebra).
    eb1_eff = (params["encoder_b1"].reshape(1, D).astype(f32)
               - db2 @ params["encoder_w1"].T.astype(f32))
    eb2 = params["encoder_b2"].reshape(1, N).astype(f32)
    db1 = params["decoder_b1"].reshape(1, D).astype(f32)

    # ---- pick a batch tile that fits the VMEM budget on every TPU gen ----
    if block_b is None:
        block_b = 8
        for cand in (1024, 512, 256, 128, 64, 32, 16, 8):
            if cand <= max(B, 8) and _estimate_vmem_bytes(cand, C, D, N, cbytes) <= vmem_budget_bytes:
                block_b = cand
                break
    block_b = max(8, min(block_b, max(B, 8)))
    block_b = -(-block_b // 8) * 8                   # sublane-aligned

    n_blocks = pl.cdiv(B, block_b)
    Bp = n_blocks * block_b
    x_c = x.astype(compute_dtype)
    if Bp != B:
        x_c = jnp.pad(x_c, ((0, Bp - B), (0, 0)))    # padded rows sliced off below

    n_sub = 2 if (block_b >= 16 and block_b % 16 == 0) else 1

    out = pl.pallas_call(
        functools.partial(_sae_kernel, k=int(k), n_sub=n_sub),
        out_shape=jax.ShapeDtypeStruct((Bp, C), x.dtype),
        grid=(n_blocks,),
        in_specs=[
            pl.BlockSpec((block_b, C), lambda i: (i, 0)),    # x tile (pipelined)
            pl.BlockSpec((C, D), lambda i: (0, 0)),          # weights/biases:
            pl.BlockSpec((1, D), lambda i: (0, 0)),          # constant index map
            pl.BlockSpec((D, N), lambda i: (0, 0)),          # -> VMEM-resident
            pl.BlockSpec((1, N), lambda i: (0, 0)),
            pl.BlockSpec((N, D), lambda i: (0, 0)),
            pl.BlockSpec((1, D), lambda i: (0, 0)),
            pl.BlockSpec((D, C), lambda i: (0, 0)),
            pl.BlockSpec((1, C), lambda i: (0, 0)),
        ],
        out_specs=pl.BlockSpec((block_b, C), lambda i: (i, 0)),
        compiler_params=pltpu.CompilerParams(
            dimension_semantics=("parallel",),       # 2-TC sharding on v7x
            vmem_limit_bytes=48 * 1024 * 1024,       # safe on 64 MiB (v7x) & 128 MiB
        ),
    )(x_c, ew1t, eb1_eff, ew2t, eb2, dw1t, db1, dw2t, db2)
    return out[:B] if Bp != B else out


# ---------------- plain-JAX reference (module semantics; same compute dtype) --
def reference_forward(x, p, k, compute_dtype=jnp.bfloat16):
    f32 = jnp.float32
    cdt = compute_dtype
    b2 = p["decoder_b2"].reshape(1, -1).astype(f32)
    h = (x.astype(f32) - b2).astype(cdt)
    h = jnp.dot(h, p["encoder_w1"].T.astype(cdt), preferred_element_type=f32)
    h = _gelu_exact(h + p["encoder_b1"].reshape(1, -1).astype(f32))
    s = jnp.dot(h.astype(cdt), p["encoder_w2"].T.astype(cdt), preferred_element_type=f32)
    s = s + p["encoder_b2"].reshape(1, -1).astype(f32)
    _, idx = jax.lax.top_k(s, k)
    mask = jnp.zeros_like(s).at[jnp.arange(s.shape[0])[:, None], idx].set(1.0)
    z = jax.nn.relu(s * mask)
    d = jnp.dot(z.astype(cdt), p["decoder_w1"].T.astype(cdt), preferred_element_type=f32)
    d = _gelu_exact(d + p["decoder_b1"].reshape(1, -1).astype(f32))
    out = jnp.dot(d.astype(cdt), p["decoder_w2"].T.astype(cdt), preferred_element_type=f32)
    return out + b2


# ---------------- deterministic parameter init (matches __init__ shapes) -----
def kaiming_uniform(key, out_f, in_f):
    # torch.nn.init.kaiming_uniform_ defaults: bound=sqrt(6/fan_in)
    bound = math.sqrt(6.0 / in_f)
    return jax.random.uniform(key, (out_f, in_f), jnp.float32, -bound, bound)


if __name__ == "__main__":
    dim, dense_hidden, hidden_features, k = 32, 64, 128, 16
    B = 64

    key = jax.random.PRNGKey(0)
    k1, k2, k3, k4, k5, k6, k7, kx = jax.random.split(key, 8)
    params = {
        "encoder_w1": kaiming_uniform(k1, dense_hidden, dim),
        "encoder_b1": 0.02 * jax.random.normal(k5, (dense_hidden,), jnp.float32),
        "encoder_w2": kaiming_uniform(k2, hidden_features, dense_hidden),
        "encoder_b2": 0.02 * jax.random.normal(k6, (hidden_features,), jnp.float32),
        "decoder_w1": kaiming_uniform(k3, dense_hidden, hidden_features),
        "decoder_b1": 0.02 * jax.random.normal(k7, (dense_hidden,), jnp.float32),
        "decoder_w2": kaiming_uniform(k4, dim, dense_hidden),
        "decoder_b2": jnp.zeros((dim,), jnp.float32),     # as in module __init__
    }
    x = jax.random.normal(kx, (B, dim), jnp.float32)

    # block_b=32 -> grid=(2,) with 2 sub-tiles per step (exercises the pipeline).
    out = topk_mlp_sae(x, params, k, block_b=32)
    out = jax.block_until_ready(out)

    ref = reference_forward(x, params, k, compute_dtype=jnp.bfloat16)
    assert out.shape == (B, dim), out.shape
    err = float(jnp.max(jnp.abs(out - ref)))
    assert err < 1e-2, err
    print("KERNEL_OK")
</pallas_src>

<mosaic_0001>
module attributes {stable_mosaic.version = 11 : i64} {
  func.func @_sae_kernel(%arg0: i32, %arg1: memref<32x32xbf16, #tpu.memory_space<vmem>>, %arg2: memref<32x64xbf16, #tpu.memory_space<vmem>>, %arg3: memref<1x64xf32, #tpu.memory_space<vmem>>, %arg4: memref<64x128xbf16, #tpu.memory_space<vmem>>, %arg5: memref<1x128xf32, #tpu.memory_space<vmem>>, %arg6: memref<128x64xbf16, #tpu.memory_space<vmem>>, %arg7: memref<1x64xf32, #tpu.memory_space<vmem>>, %arg8: memref<64x32xbf16, #tpu.memory_space<vmem>>, %arg9: memref<1x32xf32, #tpu.memory_space<vmem>>, %arg10: memref<32x32xf32, #tpu.memory_space<vmem>>) attributes {dimension_semantics = [#tpu.dimension_semantics<parallel>], iteration_bounds = array<i64: 2>, scalar_prefetch = 0 : i64, scratch_operands = 0 : i64, tpu.core_type = #tpu.core_type<tc>, window_params = [{transform_indices = @transform_0, window_bounds = array<i64: 32, 32>}, {pipeline_mode = #tpu.pipeline_mode<synchronous>, transform_indices = @transform_1, window_bounds = array<i64: 32, 64>}, {pipeline_mode = #tpu.pipeline_mode<synchronous>, transform_indices = @transform_2, window_bounds = array<i64: 1, 64>}, {pipeline_mode = #tpu.pipeline_mode<synchronous>, transform_indices = @transform_3, window_bounds = array<i64: 64, 128>}, {pipeline_mode = #tpu.pipeline_mode<synchronous>, transform_indices = @transform_4, window_bounds = array<i64: 1, 128>}, {pipeline_mode = #tpu.pipeline_mode<synchronous>, transform_indices = @transform_5, window_bounds = array<i64: 128, 64>}, {pipeline_mode = #tpu.pipeline_mode<synchronous>, transform_indices = @transform_6, window_bounds = array<i64: 1, 64>}, {pipeline_mode = #tpu.pipeline_mode<synchronous>, transform_indices = @transform_7, window_bounds = array<i64: 64, 32>}, {pipeline_mode = #tpu.pipeline_mode<synchronous>, transform_indices = @transform_8, window_bounds = array<i64: 1, 32>}, {transform_indices = @transform_9, window_bounds = array<i64: 32, 32>}]} {
    %c0 = arith.constant 0 : index
    %c0_0 = arith.constant 0 : index
    %0 = vector.load %arg2[%c0, %c0_0] : memref<32x64xbf16, #tpu.memory_space<vmem>>, vector<32x64xbf16>
    %c0_1 = arith.constant 0 : index
    %c0_2 = arith.constant 0 : index
    %1 = vector.load %arg3[%c0_1, %c0_2] : memref<1x64xf32, #tpu.memory_space<vmem>>, vector<1x64xf32>
    %c0_3 = arith.constant 0 : index
    %c0_4 = arith.constant 0 : index
    %2 = vector.load %arg4[%c0_3, %c0_4] : memref<64x128xbf16, #tpu.memory_space<vmem>>, vector<64x128xbf16>
    %c0_5 = arith.constant 0 : index
    %c0_6 = arith.constant 0 : index
    %3 = vector.load %arg5[%c0_5, %c0_6] : memref<1x128xf32, #tpu.memory_space<vmem>>, vector<1x128xf32>
    %c0_7 = arith.constant 0 : index
    %c0_8 = arith.constant 0 : index
    %4 = vector.load %arg6[%c0_7, %c0_8] : memref<128x64xbf16, #tpu.memory_space<vmem>>, vector<128x64xbf16>
    %c0_9 = arith.constant 0 : index
    %c0_10 = arith.constant 0 : index
    %5 = vector.load %arg7[%c0_9, %c0_10] : memref<1x64xf32, #tpu.memory_space<vmem>>, vector<1x64xf32>
    %c0_11 = arith.constant 0 : index
    %c0_12 = arith.constant 0 : index
    %6 = vector.load %arg8[%c0_11, %c0_12] : memref<64x32xbf16, #tpu.memory_space<vmem>>, vector<64x32xbf16>
    %c0_13 = arith.constant 0 : index
    %c0_14 = arith.constant 0 : index
    %7 = vector.load %arg9[%c0_13, %c0_14] : memref<1x32xf32, #tpu.memory_space<vmem>>, vector<1x32xf32>
    %c0_15 = arith.constant 0 : index
    %c0_16 = arith.constant 0 : index
    %8 = vector.load %arg1[%c0_15, %c0_16] : memref<32x32xbf16, #tpu.memory_space<vmem>>, vector<16x32xbf16>
    %cst = arith.constant dense<0.000000e+00> : vector<16x64xf32>
    %9 = tpu.matmul %8, %0, %cst {dimension_numbers = #tpu.dot_dimension_numbers<[1], [0], [0], [1], [0, 0, 1, 1], [], []>} : vector<16x32xbf16>, vector<32x64xbf16>, vector<16x64xf32> -> vector<16x64xf32>
    %10 = vector.broadcast %1 : vector<1x64xf32> to vector<16x64xf32>
    %11 = arith.addf %9, %10 : vector<16x64xf32>
    %cst_17 = arith.constant 5.000000e-01 : f32
    %12 = vector.broadcast %cst_17 : f32 to vector<16x64xf32>
    %13 = arith.mulf %12, %11 : vector<16x64xf32>
    %cst_18 = arith.constant 0.707106769 : f32
    %14 = vector.broadcast %cst_18 : f32 to vector<16x64xf32>
    %15 = arith.mulf %11, %14 : vector<16x64xf32>
    %16 = math.erf %15 : vector<16x64xf32>
    %cst_19 = arith.constant 1.000000e+00 : f32
    %17 = vector.broadcast %cst_19 : f32 to vector<16x64xf32>
    %18 = arith.addf %17, %16 : vector<16x64xf32>
    %19 = arith.mulf %13, %18 : vector<16x64xf32>
    %20 = arith.truncf %19 : vector<16x64xf32> to vector<16x64xbf16>
    %cst_20 = arith.constant dense<0.000000e+00> : vector<16x128xf32>
    %21 = tpu.matmul %20, %2, %cst_20 {dimension_numbers = #tpu.dot_dimension_numbers<[1], [0], [0], [1], [0, 0, 1, 1], [], []>} : vector<16x64xbf16>, vector<64x128xbf16>, vector<16x128xf32> -> vector<16x128xf32>
    %22 = vector.broadcast %3 : vector<1x128xf32> to vector<16x128xf32>
    %23 = arith.addf %21, %22 : vector<16x128xf32>
    %cst_21 = arith.constant dense<0xFF800000> : vector<16xf32>
    %24 = vector.multi_reduction <maximumf>, %23, %cst_21 [1] : vector<16x128xf32> to vector<16xf32>
    %25 = vector.shape_cast %24 : vector<16xf32> to vector<16x1xf32>
    %26 = vector.broadcast %25 : vector<16x1xf32> to vector<16x128xf32>
    %27 = arith.cmpf oge, %23, %26 : vector<16x128xf32>
    %cst_22 = arith.constant 0xFF800000 : f32
    %28 = vector.broadcast %cst_22 : f32 to vector<16x128xf32>
    %29 = arith.select %27, %28, %23 : vector<16x128xi1>, vector<16x128xf32>
    %cst_23 = arith.constant dense<0xFF800000> : vector<16xf32>
    %30 = vector.multi_reduction <maximumf>, %29, %cst_23 [1] : vector<16x128xf32> to vector<16xf32>
    %31 = vector.shape_cast %30 : vector<16xf32> to vector<16x1xf32>
    %32 = vector.broadcast %31 : vector<16x1xf32> to vector<16x128xf32>
    %33 = arith.cmpf oge, %29, %32 : vector<16x128xf32>
    %cst_24 = arith.constant 0xFF800000 : f32
    %34 = vector.broadcast %cst_24 : f32 to vector<16x128xf32>
    %35 = arith.select %33, %34, %29 : vector<16x128xi1>, vector<16x128xf32>
    %cst_25 = arith.constant dense<0xFF800000> : vector<16xf32>
    %36 = vector.multi_reduction <maximumf>, %35, %cst_25 [1] : vector<16x128xf32> to vector<16xf32>
    %37 = vector.shape_cast %36 : vector<16xf32> to vector<16x1xf32>
    %38 = vector.broadcast %37 : vector<16x1xf32> to vector<16x128xf32>
    %39 = arith.cmpf oge, %35, %38 : vector<16x128xf32>
    %cst_26 = arith.constant 0xFF800000 : f32
    %40 = vector.broadcast %cst_26 : f32 to vector<16x128xf32>
    %41 = arith.select %39, %40, %35 : vector<16x128xi1>, vector<16x128xf32>
    %cst_27 = arith.constant dense<0xFF800000> : vector<16xf32>
    %42 = vector.multi_reduction <maximumf>, %41, %cst_27 [1] : vector<16x128xf32> to vector<16xf32>
    %43 = vector.shape_cast %42 : vector<16xf32> to vector<16x1xf32>
    %44 = vector.broadcast %43 : vector<16x1xf32> to vector<16x128xf32>
    %45 = arith.cmpf oge, %41, %44 : vector<16x128xf32>
    %cst_28 = arith.constant 0xFF800000 : f32
    %46 = vector.broadcast %cst_28 : f32 to vector<16x128xf32>
    %47 = arith.select %45, %46, %41 : vector<16x128xi1>, vector<16x128xf32>
    %cst_29 = arith.constant dense<0xFF800000> : vector<16xf32>
    %48 = vector.multi_reduction <maximumf>, %47, %cst_29 [1] : vector<16x128xf32> to vector<16xf32>
    %49 = vector.shape_cast %48 : vector<16xf32> to vector<16x1xf32>
    %50 = vector.broadcast %49 : vector<16x1xf32> to vector<16x128xf32>
    %51 = arith.cmpf oge, %47, %50 : vector<16x128xf32>
    %cst_30 = arith.constant 0xFF800000 : f32
    %52 = vector.broadcast %cst_30 : f32 to vector<16x128xf32>
    %53 = arith.select %51, %52, %47 : vector<16x128xi1>, vector<16x128xf32>
    %cst_31 = arith.constant dense<0xFF800000> : vector<16xf32>
    %54 = vector.multi_reduction <maximumf>, %53, %cst_31 [1] : vector<16x128xf32> to vector<16xf32>
    %55 = vector.shape_cast %54 : vector<16xf32> to vector<16x1xf32>
    %56 = vector.broadcast %55 : vector<16x1xf32> to vector<16x128xf32>
    %57 = arith.cmpf oge, %53, %56 : vector<16x128xf32>
    %cst_32 = arith.constant 0xFF800000 : f32
    %58 = vector.broadcast %cst_32 : f32 to vector<16x128xf32>
    %59 = arith.select %57, %58, %53 : vector<16x128xi1>, vector<16x128xf32>
    %cst_33 = arith.constant dense<0xFF800000> : vector<16xf32>
    %60 = vector.multi_reduction <maximumf>, %59, %cst_33 [1] : vector<16x128xf32> to vector<16xf32>
    %61 = vector.shape_cast %60 : vector<16xf32> to vector<16x1xf32>
    %62 = vector.broadcast %61 : vector<16x1xf32> to vector<16x128xf32>
    %63 = arith.cmpf oge, %59, %62 : vector<16x128xf32>
    %cst_34 = arith.constant 0xFF800000 : f32
    %64 = vector.broadcast %cst_34 : f32 to vector<16x128xf32>
    %65 = arith.select %63, %64, %59 : vector<16x128xi1>, vector<16x128xf32>
    %cst_35 = arith.constant dense<0xFF800000> : vector<16xf32>
    %66 = vector.multi_reduction <maximumf>, %65, %cst_35 [1] : vector<16x128xf32> to vector<16xf32>
    %67 = vector.shape_cast %66 : vector<16xf32> to vector<16x1xf32>
    %68 = vector.broadcast %67 : vector<16x1xf32> to vector<16x128xf32>
    %69 = arith.cmpf oge, %65, %68 : vector<16x128xf32>
    %cst_36 = arith.constant 0xFF800000 : f32
    %70 = vector.broadcast %cst_36 : f32 to vector<16x128xf32>
    %71 = arith.select %69, %70, %65 : vector<16x128xi1>, vector<16x128xf32>
    %cst_37 = arith.constant dense<0xFF800000> : vector<16xf32>
    %72 = vector.multi_reduction <maximumf>, %71, %cst_37 [1] : vector<16x128xf32> to vector<16xf32>
    %73 = vector.shape_cast %72 : vector<16xf32> to vector<16x1xf32>
    %74 = vector.broadcast %73 : vector<16x1xf32> to vector<16x128xf32>
    %75 = arith.cmpf oge, %71, %74 : vector<16x128xf32>
    %cst_38 = arith.constant 0xFF800000 : f32
    %76 = vector.broadcast %cst_38 : f32 to vector<16x128xf32>
    %77 = arith.select %75, %76, %71 : vector<16x128xi1>, vector<16x128xf32>
    %cst_39 = arith.constant dense<0xFF800000> : vector<16xf32>
    %78 = vector.multi_reduction <maximumf>, %77, %cst_39 [1] : vector<16x128xf32> to vector<16xf32>
    %79 = vector.shape_cast %78 : vector<16xf32> to vector<16x1xf32>
    %80 = vector.broadcast %79 : vector<16x1xf32> to vector<16x128xf32>
    %81 = arith.cmpf oge, %77, %80 : vector<16x128xf32>
    %cst_40 = arith.constant 0xFF800000 : f32
    %82 = vector.broadcast %cst_40 : f32 to vector<16x128xf32>
    %83 = arith.select %81, %82, %77 : vector<16x128xi1>, vector<16x128xf32>
    %cst_41 = arith.constant dense<0xFF800000> : vector<16xf32>
    %84 = vector.multi_reduction <maximumf>, %83, %cst_41 [1] : vector<16x128xf32> to vector<16xf32>
    %85 = vector.shape_cast %84 : vector<16xf32> to vector<16x1xf32>
    %86 = vector.broadcast %85 : vector<16x1xf32> to vector<16x128xf32>
    %87 = arith.cmpf oge, %83, %86 : vector<16x128xf32>
    %cst_42 = arith.constant 0xFF800000 : f32
    %88 = vector.broadcast %cst_42 : f32 to vector<16x128xf32>
    %89 = arith.select %87, %88, %83 : vector<16x128xi1>, vector<16x128xf32>
    %cst_43 = arith.constant dense<0xFF800000> : vector<16xf32>
    %90 = vector.multi_reduction <maximumf>, %89, %cst_43 [1] : vector<16x128xf32> to vector<16xf32>
    %91 = vector.shape_cast %90 : vector<16xf32> to vector<16x1xf32>
    %92 = vector.broadcast %91 : vector<16x1xf32> to vector<16x128xf32>
    %93 = arith.cmpf oge, %89, %92 : vector<16x128xf32>
    %cst_44 = arith.constant 0xFF800000 : f32
    %94 = vector.broadcast %cst_44 : f32 to vector<16x128xf32>
    %95 = arith.select %93, %94, %89 : vector<16x128xi1>, vector<16x128xf32>
    %cst_45 = arith.constant dense<0xFF800000> : vector<16xf32>
    %96 = vector.multi_reduction <maximumf>, %95, %cst_45 [1] : vector<16x128xf32> to vector<16xf32>
    %97 = vector.shape_cast %96 : vector<16xf32> to vector<16x1xf32>
    %98 = vector.broadcast %97 : vector<16x1xf32> to vector<16x128xf32>
    %99 = arith.cmpf oge, %95, %98 : vector<16x128xf32>
    %cst_46 = arith.constant 0xFF800000 : f32
    %100 = vector.broadcast %cst_46 : f32 to vector<16x128xf32>
    %101 = arith.select %99, %100, %95 : vector<16x128xi1>, vector<16x128xf32>
    %cst_47 = arith.constant dense<0xFF800000> : vector<16xf32>
    %102 = vector.multi_reduction <maximumf>, %101, %cst_47 [1] : vector<16x128xf32> to vector<16xf32>
    %103 = vector.shape_cast %102 : vector<16xf32> to vector<16x1xf32>
    %104 = vector.broadcast %103 : vector<16x1xf32> to vector<16x128xf32>
    %105 = arith.cmpf oge, %101, %104 : vector<16x128xf32>
    %cst_48 = arith.constant 0xFF800000 : f32
    %106 = vector.broadcast %cst_48 : f32 to vector<16x128xf32>
    %107 = arith.select %105, %106, %101 : vector<16x128xi1>, vector<16x128xf32>
    %cst_49 = arith.constant dense<0xFF800000> : vector<16xf32>
    %108 = vector.multi_reduction <maximumf>, %107, %cst_49 [1] : vector<16x128xf32> to vector<16xf32>
    %109 = vector.shape_cast %108 : vector<16xf32> to vector<16x1xf32>
    %110 = vector.broadcast %109 : vector<16x1xf32> to vector<16x128xf32>
    %111 = arith.cmpf oge, %107, %110 : vector<16x128xf32>
    %cst_50 = arith.constant 0xFF800000 : f32
    %112 = vector.broadcast %cst_50 : f32 to vector<16x128xf32>
    %113 = arith.select %111, %112, %107 : vector<16x128xi1>, vector<16x128xf32>
    %cst_51 = arith.constant dense<0xFF800000> : vector<16xf32>
    %114 = vector.multi_reduction <maximumf>, %113, %cst_51 [1] : vector<16x128xf32> to vector<16xf32>
    %115 = vector.shape_cast %114 : vector<16xf32> to vector<16x1xf32>
    %116 = vector.broadcast %115 : vector<16x1xf32> to vector<16x128xf32>
    %117 = arith.cmpf oge, %23, %116 : vector<16x128xf32>
    %cst_52 = arith.constant 0.000000e+00 : f32
    %118 = vector.broadcast %cst_52 : f32 to vector<16x128xf32>
    %119 = arith.maximumf %23, %118 : vector<16x128xf32>
    %cst_53 = arith.constant 0.000000e+00 : f32
    %120 = vector.broadcast %cst_53 : f32 to vector<16x128xf32>
    %121 = arith.select %117, %119, %120 : vector<16x128xi1>, vector<16x128xf32>
    %122 = arith.truncf %121 : vector<16x128xf32> to vector<16x128xbf16>
    %cst_54 = arith.constant dense<0.000000e+00> : vector<16x64xf32>
    %123 = tpu.matmul %122, %4, %cst_54 {dimension_numbers = #tpu.dot_dimension_numbers<[1], [0], [0], [1], [0, 0, 1, 1], [], []>} : vector<16x128xbf16>, vector<128x64xbf16>, vector<16x64xf32> -> vector<16x64xf32>
    %124 = vector.broadcast %5 : vector<1x64xf32> to vector<16x64xf32>
    %125 = arith.addf %123, %124 : vector<16x64xf32>
    %cst_55 = arith.constant 5.000000e-01 : f32
    %126 = vector.broadcast %cst_55 : f32 to vector<16x64xf32>
    %127 = arith.mulf %126, %125 : vector<16x64xf32>
    %cst_56 = arith.constant 0.707106769 : f32
    %128 = vector.broadcast %cst_56 : f32 to vector<16x64xf32>
    %129 = arith.mulf %125, %128 : vector<16x64xf32>
    %130 = math.erf %129 : vector<16x64xf32>
    %cst_57 = arith.constant 1.000000e+00 : f32
    %131 = vector.broadcast %cst_57 : f32 to vector<16x64xf32>
    %132 = arith.addf %131, %130 : vector<16x64xf32>
    %133 = arith.mulf %127, %132 : vector<16x64xf32>
    %134 = arith.truncf %133 : vector<16x64xf32> to vector<16x64xbf16>
    %cst_58 = arith.constant dense<0.000000e+00> : vector<16x32xf32>
    %135 = tpu.matmul %134, %6, %cst_58 {dimension_numbers = #tpu.dot_dimension_numbers<[1], [0], [0], [1], [0, 0, 1, 1], [], []>} : vector<16x64xbf16>, vector<64x32xbf16>, vector<16x32xf32> -> vector<16x32xf32>
    %136 = vector.broadcast %7 : vector<1x32xf32> to vector<16x32xf32>
    %137 = arith.addf %135, %136 : vector<16x32xf32>
    %c0_59 = arith.constant 0 : index
    %c0_60 = arith.constant 0 : index
    %138 = vector.load %arg10[%c0_59, %c0_60] : memref<32x32xf32, #tpu.memory_space<vmem>>, vector<16x32xf32>
    tpu.vector_store %arg10[%c0_59, %c0_60], %137 {strides = array<i32>} : memref<32x32xf32, #tpu.memory_space<vmem>>, vector<16x32xf32>,
    %c16 = arith.constant 16 : index
    %c0_61 = arith.constant 0 : index
    %139 = vector.load %arg1[%c16, %c0_61] : memref<32x32xbf16, #tpu.memory_space<vmem>>, vector<16x32xbf16>
    %cst_62 = arith.constant dense<0.000000e+00> : vector<16x64xf32>
    %140 = tpu.matmul %139, %0, %cst_62 {dimension_numbers = #tpu.dot_dimension_numbers<[1], [0], [0], [1], [0, 0, 1, 1], [], []>} : vector<16x32xbf16>, vector<32x64xbf16>, vector<16x64xf32> -> vector<16x64xf32>
    %141 = vector.broadcast %1 : vector<1x64xf32> to vector<16x64xf32>
    %142 = arith.addf %140, %141 : vector<16x64xf32>
    %cst_63 = arith.constant 5.000000e-01 : f32
    %143 = vector.broadcast %cst_63 : f32 to vector<16x64xf32>
    %144 = arith.mulf %143, %142 : vector<16x64xf32>
    %cst_64 = arith.constant 0.707106769 : f32
    %145 = vector.broadcast %cst_64 : f32 to vector<16x64xf32>
    %146 = arith.mulf %142, %145 : vector<16x64xf32>
    %147 = math.erf %146 : vector<16x64xf32>
    %cst_65 = arith.constant 1.000000e+00 : f32
    %148 = vector.broadcast %cst_65 : f32 to vector<16x64xf32>
    %149 = arith.addf %148, %147 : vector<16x64xf32>
    %150 = arith.mulf %144, %149 : vector<16x64xf32>
    %151 = arith.truncf %150 : vector<16x64xf32> to vector<16x64xbf16>
    %cst_66 = arith.constant dense<0.000000e+00> : vector<16x128xf32>
    %152 = tpu.matmul %151, %2, %cst_66 {dimension_numbers = #tpu.dot_dimension_numbers<[1], [0], [0], [1], [0, 0, 1, 1], [], []>} : vector<16x64xbf16>, vector<64x128xbf16>, vector<16x128xf32> -> vector<16x128xf32>
    %153 = vector.broadcast %3 : vector<1x128xf32> to vector<16x128xf32>
    %154 = arith.addf %152, %153 : vector<16x128xf32>
    %cst_67 = arith.constant dense<0xFF800000> : vector<16xf32>
    %155 = vector.multi_reduction <maximumf>, %154, %cst_67 [1] : vector<16x128xf32> to vector<16xf32>
    %156 = vector.shape_cast %155 : vector<16xf32> to vector<16x1xf32>
    %157 = vector.broadcast %156 : vector<16x1xf32> to vector<16x128xf32>
    %158 = arith.cmpf oge, %154, %157 : vector<16x128xf32>
    %cst_68 = arith.constant 0xFF800000 : f32
    %159 = vector.broadcast %cst_68 : f32 to vector<16x128xf32>
    %160 = arith.select %158, %159, %154 : vector<16x128xi1>, vector<16x128xf32>
    %cst_69 = arith.constant dense<0xFF800000> : vector<16xf32>
    %161 = vector.multi_reduction <maximumf>, %160, %cst_69 [1] : vector<16x128xf32> to vector<16xf32>
    %162 = vector.shape_cast %161 : vector<16xf32> to vector<16x1xf32>
    %163 = vector.broadcast %162 : vector<16x1xf32> to vector<16x128xf32>
    %164 = arith.cmpf oge, %160, %163 : vector<16x128xf32>
    %cst_70 = arith.constant 0xFF800000 : f32
    %165 = vector.broadcast %cst_70 : f32 to vector<16x128xf32>
    %166 = arith.select %164, %165, %160 : vector<16x128xi1>, vector<16x128xf32>
    %cst_71 = arith.constant dense<0xFF800000> : vector<16xf32>
    %167 = vector.multi_reduction <maximumf>, %166, %cst_71 [1] : vector<16x128xf32> to vector<16xf32>
    %168 = vector.shape_cast %167 : vector<16xf32> to vector<16x1xf32>
    %169 = vector.broadcast %168 : vector<16x1xf32> to vector<16x128xf32>
    %170 = arith.cmpf oge, %166, %169 : vector<16x128xf32>
    %cst_72 = arith.constant 0xFF800000 : f32
    %171 = vector.broadcast %cst_72 : f32 to vector<16x128xf32>
    %172 = arith.select %170, %171, %166 : vector<16x128xi1>, vector<16x128xf32>
    %cst_73 = arith.constant dense<0xFF800000> : vector<16xf32>
    %173 = vector.multi_reduction <maximumf>, %172, %cst_73 [1] : vector<16x128xf32> to vector<16xf32>
    %174 = vector.shape_cast %173 : vector<16xf32> to vector<16x1xf32>
    %175 = vector.broadcast %174 : vector<16x1xf32> to vector<16x128xf32>
    %176 = arith.cmpf oge, %172, %175 : vector<16x128xf32>
    %cst_74 = arith.constant 0xFF800000 : f32
    %177 = vector.broadcast %cst_74 : f32 to vector<16x128xf32>
    %178 = arith.select %176, %177, %172 : vector<16x128xi1>, vector<16x128xf32>
    %cst_75 = arith.constant dense<0xFF800000> : vector<16xf32>
    %179 = vector.multi_reduction <maximumf>, %178, %cst_75 [1] : vector<16x128xf32> to vector<16xf32>
    %180 = vector.shape_cast %179 : vector<16xf32> to vector<16x1xf32>
    %181 = vector.broadcast %180 : vector<16x1xf32> to vector<16x128xf32>
    %182 = arith.cmpf oge, %178, %181 : vector<16x128xf32>
    %cst_76 = arith.constant 0xFF800000 : f32
    %183 = vector.broadcast %cst_76 : f32 to vector<16x128xf32>
    %184 = arith.select %182, %183, %178 : vector<16x128xi1>, vector<16x128xf32>
    %cst_77 = arith.constant dense<0xFF800000> : vector<16xf32>
    %185 = vector.multi_reduction <maximumf>, %184, %cst_77 [1] : vector<16x128xf32> to vector<16xf32>
    %186 = vector.shape_cast %185 : vector<16xf32> to vector<16x1xf32>
    %187 = vector.broadcast %186 : vector<16x1xf32> to vector<16x128xf32>
    %188 = arith.cmpf oge, %184, %187 : vector<16x128xf32>
    %cst_78 = arith.constant 0xFF800000 : f32
    %189 = vector.broadcast %cst_78 : f32 to vector<16x128xf32>
    %190 = arith.select %188, %189, %184 : vector<16x128xi1>, vector<16x128xf32>
    %cst_79 = arith.constant dense<0xFF800000> : vector<16xf32>
    %191 = vector.multi_reduction <maximumf>, %190, %cst_79 [1] : vector<16x128xf32> to vector<16xf32>
    %192 = vector.shape_cast %191 : vector<16xf32> to vector<16x1xf32>
    %193 = vector.broadcast %192 : vector<16x1xf32> to vector<16x128xf32>
    %194 = arith.cmpf oge, %190, %193 : vector<16x128xf32>
    %cst_80 = arith.constant 0xFF800000 : f32
    %195 = vector.broadcast %cst_80 : f32 to vector<16x128xf32>
    %196 = arith.select %194, %195, %190 : vector<16x128xi1>, vector<16x128xf32>
    %cst_81 = arith.constant dense<0xFF800000> : vector<16xf32>
    %197 = vector.multi_reduction <maximumf>, %196, %cst_81 [1] : vector<16x128xf32> to vector<16xf32>
    %198 = vector.shape_cast %197 : vector<16xf32> to vector<16x1xf32>
    %199 = vector.broadcast %198 : vector<16x1xf32> to vector<16x128xf32>
    %200 = arith.cmpf oge, %196, %199 : vector<16x128xf32>
    %cst_82 = arith.constant 0xFF800000 : f32
    %201 = vector.broadcast %cst_82 : f32 to vector<16x128xf32>
    %202 = arith.select %200, %201, %196 : vector<16x128xi1>, vector<16x128xf32>
    %cst_83 = arith.constant dense<0xFF800000> : vector<16xf32>
    %203 = vector.multi_reduction <maximumf>, %202, %cst_83 [1] : vector<16x128xf32> to vector<16xf32>
    %204 = vector.shape_cast %203 : vector<16xf32> to vector<16x1xf32>
    %205 = vector.broadcast %204 : vector<16x1xf32> to vector<16x128xf32>
    %206 = arith.cmpf oge, %202, %205 : vector<16x128xf32>
    %cst_84 = arith.constant 0xFF800000 : f32
    %207 = vector.broadcast %cst_84 : f32 to vector<16x128xf32>
    %208 = arith.select %206, %207, %202 : vector<16x128xi1>, vector<16x128xf32>
    %cst_85 = arith.constant dense<0xFF800000> : vector<16xf32>
    %209 = vector.multi_reduction <maximumf>, %208, %cst_85 [1] : vector<16x128xf32> to vector<16xf32>
    %210 = vector.shape_cast %209 : vector<16xf32> to vector<16x1xf32>
    %211 = vector.broadcast %210 : vector<16x1xf32> to vector<16x128xf32>
    %212 = arith.cmpf oge, %208, %211 : vector<16x128xf32>
    %cst_86 = arith.constant 0xFF800000 : f32
    %213 = vector.broadcast %cst_86 : f32 to vector<16x128xf32>
    %214 = arith.select %212, %213, %208 : vector<16x128xi1>, vector<16x128xf32>
    %cst_87 = arith.constant dense<0xFF800000> : vector<16xf32>
    %215 = vector.multi_reduction <maximumf>, %214, %cst_87 [1] : vector<16x128xf32> to vector<16xf32>
    %216 = vector.shape_cast %215 : vector<16xf32> to vector<16x1xf32>
    %217 = vector.broadcast %216 : vector<16x1xf32> to vector<16x128xf32>
    %218 = arith.cmpf oge, %214, %217 : vector<16x128xf32>
    %cst_88 = arith.constant 0xFF800000 : f32
    %219 = vector.broadcast %cst_88 : f32 to vector<16x128xf32>
    %220 = arith.select %218, %219, %214 : vector<16x128xi1>, vector<16x128xf32>
    %cst_89 = arith.constant dense<0xFF800000> : vector<16xf32>
    %221 = vector.multi_reduction <maximumf>, %220, %cst_89 [1] : vector<16x128xf32> to vector<16xf32>
    %222 = vector.shape_cast %221 : vector<16xf32> to vector<16x1xf32>
    %223 = vector.broadcast %222 : vector<16x1xf32> to vector<16x128xf32>
    %224 = arith.cmpf oge, %220, %223 : vector<16x128xf32>
    %cst_90 = arith.constant 0xFF800000 : f32
    %225 = vector.broadcast %cst_90 : f32 to vector<16x128xf32>
    %226 = arith.select %224, %225, %220 : vector<16x128xi1>, vector<16x128xf32>
    %cst_91 = arith.constant dense<0xFF800000> : vector<16xf32>
    %227 = vector.multi_reduction <maximumf>, %226, %cst_91 [1] : vector<16x128xf32> to vector<16xf32>
    %228 = vector.shape_cast %227 : vector<16xf32> to vector<16x1xf32>
    %229 = vector.broadcast %228 : vector<16x1xf32> to vector<16x128xf32>
    %230 = arith.cmpf oge, %226, %229 : vector<16x128xf32>
    %cst_92 = arith.constant 0xFF800000 : f32
    %231 = vector.broadcast %cst_92 : f32 to vector<16x128xf32>
    %232 = arith.select %230, %231, %226 : vector<16x128xi1>, vector<16x128xf32>
    %cst_93 = arith.constant dense<0xFF800000> : vector<16xf32>
    %233 = vector.multi_reduction <maximumf>, %232, %cst_93 [1] : vector<16x128xf32> to vector<16xf32>
    %234 = vector.shape_cast %233 : vector<16xf32> to vector<16x1xf32>
    %235 = vector.broadcast %234 : vector<16x1xf32> to vector<16x128xf32>
    %236 = arith.cmpf oge, %232, %235 : vector<16x128xf32>
    %cst_94 = arith.constant 0xFF800000 : f32
    %237 = vector.broadcast %cst_94 : f32 to vector<16x128xf32>
    %238 = arith.select %236, %237, %232 : vector<16x128xi1>, vector<16x128xf32>
    %cst_95 = arith.constant dense<0xFF800000> : vector<16xf32>
    %239 = vector.multi_reduction <maximumf>, %238, %cst_95 [1] : vector<16x128xf32> to vector<16xf32>
    %240 = vector.shape_cast %239 : vector<16xf32> to vector<16x1xf32>
    %241 = vector.broadcast %240 : vector<16x1xf32> to vector<16x128xf32>
    %242 = arith.cmpf oge, %238, %241 : vector<16x128xf32>
    %cst_96 = arith.constant 0xFF800000 : f32
    %243 = vector.broadcast %cst_96 : f32 to vector<16x128xf32>
    %244 = arith.select %242, %243, %238 : vector<16x128xi1>, vector<16x128xf32>
    %cst_97 = arith.constant dense<0xFF800000> : vector<16xf32>
    %245 = vector.multi_reduction <maximumf>, %244, %cst_97 [1] : vector<16x128xf32> to vector<16xf32>
    %246 = vector.shape_cast %245 : vector<16xf32> to vector<16x1xf32>
    %247 = vector.broadcast %246 : vector<16x1xf32> to vector<16x128xf32>
    %248 = arith.cmpf oge, %154, %247 : vector<16x128xf32>
    %cst_98 = arith.constant 0.000000e+00 : f32
    %249 = vector.broadcast %cst_98 : f32 to vector<16x128xf32>
    %250 = arith.maximumf %154, %249 : vector<16x128xf32>
    %cst_99 = arith.constant 0.000000e+00 : f32
    %251 = vector.broadcast %cst_99 : f32 to vector<16x128xf32>
    %252 = arith.select %248, %250, %251 : vector<16x128xi1>, vector<16x128xf32>
    %253 = arith.truncf %252 : vector<16x128xf32> to vector<16x128xbf16>
    %cst_100 = arith.constant dense<0.000000e+00> : vector<16x64xf32>
    %254 = tpu.matmul %253, %4, %cst_100 {dimension_numbers = #tpu.dot_dimension_numbers<[1], [0], [0], [1], [0, 0, 1, 1], [], []>} : vector<16x128xbf16>, vector<128x64xbf16>, vector<16x64xf32> -> vector<16x64xf32>
    %255 = vector.broadcast %5 : vector<1x64xf32> to vector<16x64xf32>
    %256 = arith.addf %254, %255 : vector<16x64xf32>
    %cst_101 = arith.constant 5.000000e-01 : f32
    %257 = vector.broadcast %cst_101 : f32 to vector<16x64xf32>
    %258 = arith.mulf %257, %256 : vector<16x64xf32>
    %cst_102 = arith.constant 0.707106769 : f32
    %259 = vector.broadcast %cst_102 : f32 to vector<16x64xf32>
    %260 = arith.mulf %256, %259 : vector<16x64xf32>
    %261 = math.erf %260 : vector<16x64xf32>
    %cst_103 = arith.constant 1.000000e+00 : f32
    %262 = vector.broadcast %cst_103 : f32 to vector<16x64xf32>
    %263 = arith.addf %262, %261 : vector<16x64xf32>
    %264 = arith.mulf %258, %263 : vector<16x64xf32>
    %265 = arith.truncf %264 : vector<16x64xf32> to vector<16x64xbf16>
    %cst_104 = arith.constant dense<0.000000e+00> : vector<16x32xf32>
    %266 = tpu.matmul %265, %6, %cst_104 {dimension_numbers = #tpu.dot_dimension_numbers<[1], [0], [0], [1], [0, 0, 1, 1], [], []>} : vector<16x64xbf16>, vector<64x32xbf16>, vector<16x32xf32> -> vector<16x32xf32>
    %267 = vector.broadcast %7 : vector<1x32xf32> to vector<16x32xf32>
    %268 = arith.addf %266, %267 : vector<16x32xf32>
    %c16_105 = arith.constant 16 : index
    %c0_106 = arith.constant 0 : index
    %269 = vector.load %arg10[%c16_105, %c0_106] : memref<32x32xf32, #tpu.memory_space<vmem>>, vector<16x32xf32>
    tpu.vector_store %arg10[%c16_105, %c0_106], %268 {strides = array<i32>} : memref<32x32xf32, #tpu.memory_space<vmem>>, vector<16x32xf32>,
    return
  }
  func.func @transform_0(%arg0: i32) -> (i32, i32) {
    %c0_i32 = arith.constant 0 : i32
    %c0_i32_0 = arith.constant 0 : i32
    return %arg0, %c0_i32 : i32, i32
  }
  func.func @transform_1(%arg0: i32) -> (i32, i32) {
    %c0_i32 = arith.constant 0 : i32
    %c0_i32_0 = arith.constant 0 : i32
    %c0_i32_1 = arith.constant 0 : i32
    return %c0_i32, %c0_i32_0 : i32, i32
  }
  func.func @transform_2(%arg0: i32) -> (i32, i32) {
    %c0_i32 = arith.constant 0 : i32
    %c0_i32_0 = arith.constant 0 : i32
    %c0_i32_1 = arith.constant 0 : i32
    return %c0_i32, %c0_i32_0 : i32, i32
  }
  func.func @transform_3(%arg0: i32) -> (i32, i32) {
    %c0_i32 = arith.constant 0 : i32
    %c0_i32_0 = arith.constant 0 : i32
    %c0_i32_1 = arith.constant 0 : i32
    return %c0_i32, %c0_i32_0 : i32, i32
  }
  func.func @transform_4(%arg0: i32) -> (i32, i32) {
    %c0_i32 = arith.constant 0 : i32
    %c0_i32_0 = arith.constant 0 : i32
    %c0_i32_1 = arith.constant 0 : i32
    return %c0_i32, %c0_i32_0 : i32, i32
  }
  func.func @transform_5(%arg0: i32) -> (i32, i32) {
    %c0_i32 = arith.constant 0 : i32
    %c0_i32_0 = arith.constant 0 : i32
    %c0_i32_1 = arith.constant 0 : i32
    return %c0_i32, %c0_i32_0 : i32, i32
  }
  func.func @transform_6(%arg0: i32) -> (i32, i32) {
    %c0_i32 = arith.constant 0 : i32
    %c0_i32_0 = arith.constant 0 : i32
    %c0_i32_1 = arith.constant 0 : i32
    return %c0_i32, %c0_i32_0 : i32, i32
  }
  func.func @transform_7(%arg0: i32) -> (i32, i32) {
    %c0_i32 = arith.constant 0 : i32
    %c0_i32_0 = arith.constant 0 : i32
    %c0_i32_1 = arith.constant 0 : i32
    return %c0_i32, %c0_i32_0 : i32, i32
  }
  func.func @transform_8(%arg0: i32) -> (i32, i32) {
    %c0_i32 = arith.constant 0 : i32
    %c0_i32_0 = arith.constant 0 : i32
    %c0_i32_1 = arith.constant 0 : i32
    return %c0_i32, %c0_i32_0 : i32, i32
  }
  func.func @transform_9(%arg0: i32) -> (i32, i32) {
    %c0_i32 = arith.constant 0 : i32
    %c0_i32_0 = arith.constant 0 : i32
    return %arg0, %c0_i32 : i32, i32
  }
}

</mosaic_0001>

<bundles_post_ra>
// kernel: tpu_custom_call.1
= control target key start
LH: loop header
LB: loop body
LE: loop exit
PB: predicated region body
PF: predicated region fallthrough
CT: control target
= control target key end

     0   :  { %s1538_s30 = smov 0   ;;  %s1821_s0 = inlined_call_operand.vmem [shape: bf16[64,32], index: 0, kind: input, shape index: {}]   ;;  %s1822_s1 = inlined_call_operand.vmem [shape: bf16[32,64], index: 1, kind: input, shape index: {}]   ;;  %s1823_s2 = inlined_call_operand.vmem [shape: f32[1,64], index: 2, kind: input, shape index: {}]   ;;  %s1824_s3 = inlined_call_operand.vmem [shape: bf16[64,128], index: 3, kind: input, shape index: {}]   ;;  %s1825_s4 = inlined_call_operand.vmem [shape: f32[1,128], index: 4, kind: input, shape index: {}]   ;;  %s1826_s5 = inlined_call_operand.vmem [shape: bf16[128,64], index: 5, kind: input, shape index: {}]   ;;  %s1827_s6 = inlined_call_operand.vmem [shape: f32[1,64], index: 6, kind: input, shape index: {}]   ;;  %s1828_s7 = inlined_call_operand.vmem [shape: bf16[64,32], index: 7, kind: input, shape index: {}]   ;;  %s1829_s8 = inlined_call_operand.vmem [shape: f32[1,32], index: 8, kind: input, shape index: {}]   ;;  %s1830_s9 = inlined_call_operand.vmem [shape: f32[64,32], index: 9, kind: output, shape index: {}]  }
   0x1 LB: > { %s1237_s10 = sadd.s32 4294967295, %s1484_s30   ;;  %p1241_p0 = scmp.ge.s32.totalorder %s1484_s30, 1  ;;  %s1484_s30 = sphi %s1538_s30, %s19_s30  }
   0x2   : > { %p288_p1 = scmp.lt.s32.totalorder %s1484_s30, 3 }
   0x4   : > { %p289_p2 = pnand %p1241_p0, %p288_p1 }
   0x5   : > { %s1242_s15 = sshll.u32 (!%p289_p2), %s1237_s10, 2 }
   0x6   : > { %292 = sbr.rel (%p289_p2) target bundleno = 5990 (0x1766), region = 56  ;;  %p325_p3 = scmp.lt.s32.totalorder (!%p289_p2), %s1242_s15, 7 }
   0xb   : > { %v1549_v0 = vld [vmem:[%s1822_s1 + $0x8] sm:$0xff]   ;;  %v1486_v1 = vmov 0.0   ;;  %v1557_v2 = vld [vmem:[%s1822_s1] sm:$0xff]   ;;  %vm1487_vm0 = vmmov 0   ;;  %s1832_s15 = smov (!%p325_p3, %s1242_s15), 7  ;;  %vm402_vm1 = vcmask 261120  }
   0xc   : > { %1328 = vmatprep.subr.bf16.mxu0 %v1486_v1  ;;  %1336 = vmatprep.subr.bf16.mxu1 %v1486_v1  ;;  %s1243_s16 = sshll.u32 %s1832_s15, 2  ;;  %v1581_v4 = vld [vmem:[%s1824_s3 + $0x18] sm:$0xff]   ;;  %v1588_v5 = vld [vmem:[%s1824_s3 + $0x10] sm:$0xff]   ;;  %v1595_v6 = vld [vmem:[%s1824_s3 + $0x8] sm:$0xff]   ;;  %vm488_vm2 = vcmask 523264  }
   0xd   : > { %1329 = vmatpush3.bf16.msra.mxu0 %v1549_v0  ;;  %1332 = vmatprep.mubr.msk.bf16.mxu0 %vm1487_vm0, %v1486_v1  ;;  %s1572_s19 = scalar_lea.vmem %s1821_s0, %s1243_s16  ;;  %v1602_v7 = vld [vmem:[%s1824_s3] sm:$0xff]  }
   0xe   : > { %1330 = vmatprep.subr.bf16.mxu0 %v1486_v1  ;;  %1344 = vmatprep.mubr.msk.bf16.mxu1 %vm1487_vm0, %v1486_v1  ;;  %v1444_v3 = vld [vmem:[%s1572_s19] sm:$0xff]  }
   0xf   : > { %1337 = vmatpush3.bf16.msra.mxu1 %v1581_v4  ;;  %v1609_v8 = vld [vmem:[%s1823_s2] ss:$0 sm:$0xff] }
  0x10   : > { %1338 = vmatprep.subr.bf16.mxu1 %v1486_v1  ;;  %v1619_v26 = vld [vmem:[%s1825_s4] ss:$0 sm:$0xff] }
  0x11   : > { %1331 = vmatpush3.bf16.msra.mxu0 %v1557_v2 }
  0x12   : > { %1348 = vmatprep.subr.bf16.mxu0 %v1486_v1 }
  0x13   : > { %1339 = vmatpush3.bf16.msra.mxu1 %v1588_v5 }
  0x14   : > { %1333 = vmatmul.mubr.msk.bf16.vlgmr.msra.gmra.mxu0 %vm402_vm1, %v1444_v3  ;;  %1340 = vmatprep.subr.bf16.mxu1 %v1486_v1 }
  0x15   : > { %1364 = vmatprep.mubr.msk.bf16.mxu0 %vm1487_vm0, %v1486_v1 }
  0x17   : > { %1341 = vmatpush3.bf16.msra.mxu1 %v1595_v6 }
  0x18   : > { %1342 = vmatprep.subr.bf16.mxu1 %v1486_v1 }
  0x1b   : > { %1343 = vmatpush3.bf16.msra.mxu1 %v1602_v7 }
  0x1c   : > { %1368 = vmatprep.subr.bf16.mxu1 %v1486_v1 }
  0xd4   : > { %v440_v9 = vpop.f32.mrf.mxu0 }
  0xd5   : > { %v441_v10 = vadd.f32 %v1609_v8, %v440_v9 }
  0xd6   : > { %v1334_v11 = vpop.f32.mrf.mxu0 }
  0xd7   : > { %v449_v12 = vmul.f32 0.70710677, %v441_v10  ;;  %v447_v20 = vmul.f32 0.5, %v441_v10 }
  0xd8   : > { %v443_v13 = vpop.f32.mrf.mxu0 }
  0xd9   : > { %1462 = verf.f32 %v449_v12  ;;  %v444_v14 = vadd.f32 %v1609_v8, %v443_v13 }
  0xda   : > { %v1335_v15 = vpop.f32.mrf.mxu0 }
  0xdb   : > { %v450_v16 = vmul.f32 0.70710677, %v444_v14  ;;  %v448_v21 = vmul.f32 0.5, %v444_v14 }
  0xdd   : > { %1464 = verf.f32 %v450_v16 }
  0xe6   : > { %v1463_v17 = vpop.eup %1462 }
  0xe7   : > { %v453_v18 = vadd.f32 1.0, %v1463_v17 }
  0xe9   : > { %v455_v23 = vmul.f32 %v453_v18, %v447_v20 }
  0xea   : > { %v1465_v19 = vpop.eup %1464 }
  0xeb   : > { %v454_v22 = vadd.f32 1.0, %v1465_v19 }
  0xed   : > { %v456_v24 = vmul.f32 %v454_v22, %v448_v21 }
  0xef   : > { %v457_v25 = vpack.c.bf16 %v456_v24, %v455_v23 }
  0xf1   : > { %1345 = vmatmul.mubr.msk.bf16.vlgmr.msra.gmra.mxu1 %vm488_vm2, %v457_v25 }
  0xf2   : > { %1376 = vmatprep.mubr.msk.bf16.mxu1 %vm1487_vm0, %v1486_v1 }
 0x1b1   : > { %v526_v27 = vpop.f32.mrf.mxu1 }
 0x1b2   : > { %v1622_v28 = vadd.f32 %v1619_v26, %v526_v27 }
 0x1b3   : > { %v1346_v29 = vpop.f32.mrf.mxu1 }
 0x1b4   : > { %533 = vmax.xlane.f32.xlu0 %v1622_v28 }
 0x1b5   : > { %v529_v30 = vpop.f32.mrf.mxu1 }
 0x1b6   : > { %v1626_v31 = vadd.f32 %v1619_v26, %v529_v30 }
 0x1b7   : > { %v1347_v32 = vpop.f32.mrf.mxu1 }
 0x1b8   : > { %535 = vmax.xlane.f32.xlu0 %v1626_v31 }
 0x23d   : > { %v534_v33 = vpop.xlane.xlu0 %533 }
 0x23e   : > { %vm537_vm3 = vcmp.ge.f32.partialorder %v1622_v28, %v534_v33 }
 0x23f   : > { %v539_v34 = vsel %vm537_vm3, -inf, %v1622_v28 }
 0x240   : > { %541 = vmax.xlane.f32.xlu1 %v539_v34 }
 0x241   : > { %v536_v35 = vpop.xlane.xlu0 %535 }
 0x242   : > { %vm538_vm4 = vcmp.ge.f32.partialorder %v1626_v31, %v536_v35 }
 0x243   : > { %v540_v36 = vsel %vm538_vm4, -inf, %v1626_v31 }
 0x244   : > { %543 = vmax.xlane.f32.xlu1 %v540_v36 }
 0x2c9   : > { %v542_v37 = vpop.xlane.xlu1 %541 }
 0x2ca   : > { %vm545_vm5 = vcmp.ge.f32.partialorder %v539_v34, %v542_v37  ;;  %v1642_v37 = vld [vmem:[%s1826_s5 + $0x30] sm:$0xff]  }
 0x2cb   : > { %v547_v38 = vsel %vm545_vm5, -inf, %v539_v34 }
 0x2cc   : > { %549 = vmax.xlane.f32.xlu0 %v547_v38 }
 0x2cd   : > { %v544_v39 = vpop.xlane.xlu1 %543 }
 0x2ce   : > { %vm546_vm6 = vcmp.ge.f32.partialorder %v540_v36, %v544_v39  ;;  %v1656_v39 = vld [vmem:[%s1826_s5 + $0x20] sm:$0xff]  }
 0x2cf   : > { %v548_v40 = vsel %vm546_vm6, -inf, %v540_v36  ;;  %v1636_v36 = vld [vmem:[%s1826_s5 + $0x38] sm:$0xff]  }
 0x2d0   : > { %551 = vmax.xlane.f32.xlu1 %v548_v40  ;;  %1349 = vmatpush3.bf16.msra.mxu0 %v1636_v36 }
 0x2d1   : > { %1350 = vmatprep.subr.bf16.mxu0 %v1486_v1 }
 0x2d4   : > { %1351 = vmatpush3.bf16.msra.mxu0 %v1642_v37 }
 0x2d5   : > { %1352 = vmatprep.subr.bf16.mxu0 %v1486_v1 }
 0x355   : > { %v550_v41 = vpop.xlane.xlu0 %549 }
 0x356   : > { %vm553_vm7 = vcmp.ge.f32.partialorder %v547_v38, %v550_v41  ;;  %v1670_v41 = vld [vmem:[%s1826_s5 + $0x10] sm:$0xff]  }
 0x357   : > { %v555_v42 = vsel %vm553_vm7, -inf, %v547_v38  ;;  %v1649_v38 = vld [vmem:[%s1826_s5 + $0x28] sm:$0xff]  }
 0x358   : > { %557 = vmax.xlane.f32.xlu0 %v555_v42  ;;  %1353 = vmatpush3.bf16.msra.mxu0 %v1649_v38 }
 0x359   : > { %v552_v43 = vpop.xlane.xlu1 %551  ;;  %1354 = vmatprep.subr.bf16.mxu0 %v1486_v1 }
 0x35a   : > { %vm554_vm8 = vcmp.ge.f32.partialorder %v548_v40, %v552_v43 }
 0x35b   : > { %v556_v44 = vsel %vm554_vm8, -inf, %v548_v40  ;;  %v1663_v40 = vld [vmem:[%s1826_s5 + $0x18] sm:$0xff]  }
 0x35c   : > { %559 = vmax.xlane.f32.xlu1 %v556_v44  ;;  %1355 = vmatpush3.bf16.msra.mxu0 %v1656_v39 }
 0x35d   : > { %1356 = vmatprep.subr.bf16.mxu0 %v1486_v1 }
 0x360   : > { %1357 = vmatpush3.bf16.msra.mxu0 %v1663_v40 }
 0x361   : > { %1358 = vmatprep.subr.bf16.mxu0 %v1486_v1 }
 0x364   : > { %1359 = vmatpush3.bf16.msra.mxu0 %v1670_v41 }
 0x365   : > { %1360 = vmatprep.subr.bf16.mxu0 %v1486_v1 }
 0x3e1   : > { %v558_v45 = vpop.xlane.xlu0 %557 }
 0x3e2   : > { %vm561_vm9 = vcmp.ge.f32.partialorder %v555_v42, %v558_v45 }
 0x3e3   : > { %v563_v46 = vsel %vm561_vm9, -inf, %v555_v42  ;;  %v1677_v42 = vld [vmem:[%s1826_s5 + $0x8] sm:$0xff]  }
 0x3e4   : > { %565 = vmax.xlane.f32.xlu0 %v563_v46  ;;  %1361 = vmatpush3.bf16.msra.mxu0 %v1677_v42 }
 0x3e5   : > { %v560_v47 = vpop.xlane.xlu1 %559  ;;  %1362 = vmatprep.subr.bf16.mxu0 %v1486_v1 }
 0x3e6   : > { %vm562_vm10 = vcmp.ge.f32.partialorder %v556_v44, %v560_v47  ;;  %v1685_v47 = vld [vmem:[%s1826_s5] sm:$0xff]  }
 0x3e7   : > { %v564_v48 = vsel %vm562_vm10, -inf, %v556_v44 }
 0x3e8   : > { %567 = vmax.xlane.f32.xlu1 %v564_v48  ;;  %1363 = vmatpush3.bf16.msra.mxu0 %v1685_v47 }
 0x3e9   : > { %1388 = vmatprep.subr.bf16.mxu0 %v1486_v1 }
 0x46d   : > { %v566_v49 = vpop.xlane.xlu0 %565 }
 0x46e   : > { %vm569_vm11 = vcmp.ge.f32.partialorder %v563_v46, %v566_v49 }
 0x46f   : > { %v571_v50 = vsel %vm569_vm11, -inf, %v563_v46 }
 0x470   : > { %573 = vmax.xlane.f32.xlu0 %v571_v50 }
 0x471   : > { %v568_v51 = vpop.xlane.xlu1 %567 }
 0x472   : > { %vm570_vm12 = vcmp.ge.f32.partialorder %v564_v48, %v568_v51 }
 0x473   : > { %v572_v52 = vsel %vm570_vm12, -inf, %v564_v48  ;;  %v660_v48 = vmax.f32 %v1626_v31, 0.0 }
 0x474   : > { %575 = vmax.xlane.f32.xlu1 %v572_v52 }
 0x4f9   : > { %v574_v53 = vpop.xlane.xlu0 %573 }
 0x4fa   : > { %vm577_vm13 = vcmp.ge.f32.partialorder %v571_v50, %v574_v53 }
 0x4fb   : > { %v579_v54 = vsel %vm577_vm13, -inf, %v571_v50  ;;  %v659_v50 = vmax.f32 %v1622_v28, 0.0 }
 0x4fc   : > { %581 = vmax.xlane.f32.xlu0 %v579_v54 }
 0x4fd   : > { %v576_v55 = vpop.xlane.xlu1 %575 }
 0x4fe   : > { %vm578_vm14 = vcmp.ge.f32.partialorder %v572_v52, %v576_v55 }
 0x4ff   : > { %v580_v56 = vsel %vm578_vm14, -inf, %v572_v52  ;;  %v1267_v52 = vpack.c.bf16 %v660_v48, %v659_v50 }
 0x500   : > { %583 = vmax.xlane.f32.xlu1 %v580_v56 }
 0x585   : > { %v582_v57 = vpop.xlane.xlu0 %581 }
 0x586   : > { %vm585_vm15 = vcmp.ge.f32.partialorder %v579_v54, %v582_v57 }
 0x587   : > { %v587_v58 = vsel %vm585_vm15, -inf, %v579_v54 }
 0x588   : > { %589 = vmax.xlane.f32.xlu0 %v587_v58 }
 0x589   : > { %v584_v59 = vpop.xlane.xlu1 %583 }
 0x58a   : > { %vm586_vm3 = vcmp.ge.f32.partialorder %v580_v56, %v584_v59 }
 0x58b   : > { %v588_v60 = vsel %vm586_vm3, -inf, %v580_v56 }
 0x58c   : > { %591 = vmax.xlane.f32.xlu1 %v588_v60 }
 0x611   : > { %v590_v61 = vpop.xlane.xlu0 %589 }
 0x612   : > { %vm593_vm4 = vcmp.ge.f32.partialorder %v587_v58, %v590_v61 }
 0x613   : > { %v595_v62 = vsel %vm593_vm4, -inf, %v587_v58 }
 0x614   : > { %597 = vmax.xlane.f32.xlu0 %v595_v62 }
 0x615   : > { %v592_v63 = vpop.xlane.xlu1 %591 }
 0x616   : > { %vm594_vm5 = vcmp.ge.f32.partialorder %v588_v60, %v592_v63 }
 0x617   : > { %v596_v3 = vsel %vm594_vm5, -inf, %v588_v60 }
 0x618   : > { %599 = vmax.xlane.f32.xlu1 %v596_v3 }
 0x69d   : > { %v598_v9 = vpop.xlane.xlu0 %597 }
 0x69e   : > { %vm601_vm6 = vcmp.ge.f32.partialorder %v595_v62, %v598_v9 }
 0x69f   : > { %v603_v10 = vsel %vm601_vm6, -inf, %v595_v62 }
 0x6a0   : > { %605 = vmax.xlane.f32.xlu0 %v603_v10 }
 0x6a1   : > { %v600_v11 = vpop.xlane.xlu1 %599 }
 0x6a2   : > { %vm602_vm7 = vcmp.ge.f32.partialorder %v596_v3, %v600_v11 }
 0x6a3   : > { %v604_v12 = vsel %vm602_vm7, -inf, %v596_v3 }
 0x6a4   : > { %607 = vmax.xlane.f32.xlu1 %v604_v12 }
 0x729   : > { %v606_v13 = vpop.xlane.xlu0 %605 }
 0x72a   : > { %vm609_vm8 = vcmp.ge.f32.partialorder %v603_v10, %v606_v13  ;;  %v1461_v13 = vld [vmem:[%s1572_s19 + $0x8] sm:$0xff]   ;;  %s1245_s19 = sshll.u32 %s1832_s15, 3 }
 0x72b   : > { %v611_v14 = vsel %vm609_vm8, -inf, %v603_v10  ;;  %s1773_s26 = scalar_lea.vmem %s1830_s9, %s1245_s19 }
 0x72c   : > { %613 = vmax.xlane.f32.xlu0 %v611_v14 }
 0x72d   : > { %v608_v15 = vpop.xlane.xlu1 %607 }
 0x72e   : > { %vm610_vm9 = vcmp.ge.f32.partialorder %v604_v12, %v608_v15 }
 0x72f   : > { %v612_v16 = vsel %vm610_vm9, -inf, %v604_v12 }
 0x730   : > { %615 = vmax.xlane.f32.xlu1 %v612_v16 }
 0x7b5   : > { %v614_v17 = vpop.xlane.xlu0 %613 }
 0x7b6   : > { %vm617_vm10 = vcmp.ge.f32.partialorder %v611_v14, %v614_v17 }
 0x7b7   : > { %v619_v18 = vsel %vm617_vm10, -inf, %v611_v14 }
 0x7b8   : > { %621 = vmax.xlane.f32.xlu0 %v619_v18 }
 0x7b9   : > { %v616_v19 = vpop.xlane.xlu1 %615 }
 0x7ba   : > { %vm618_vm11 = vcmp.ge.f32.partialorder %v612_v16, %v616_v19 }
 0x7bb   : > { %v620_v20 = vsel %vm618_vm11, -inf, %v612_v16 }
 0x7bc   : > { %623 = vmax.xlane.f32.xlu1 %v620_v20 }
 0x841   : > { %v622_v21 = vpop.xlane.xlu0 %621 }
 0x842   : > { %vm625_vm12 = vcmp.ge.f32.partialorder %v619_v18, %v622_v21 }
 0x843   : > { %v627_v22 = vsel %vm625_vm12, -inf, %v619_v18 }
 0x844   : > { %629 = vmax.xlane.f32.xlu0 %v627_v22 }
 0x845   : > { %v624_v23 = vpop.xlane.xlu1 %623 }
 0x846   : > { %vm626_vm13 = vcmp.ge.f32.partialorder %v620_v20, %v624_v23 }
 0x847   : > { %v628_v24 = vsel %vm626_vm13, -inf, %v620_v20 }
 0x848   : > { %631 = vmax.xlane.f32.xlu1 %v628_v24 }
 0x8cd   : > { %v630_v25 = vpop.xlane.xlu0 %629 }
 0x8ce   : > { %vm633_vm14 = vcmp.ge.f32.partialorder %v627_v22, %v630_v25 }
 0x8cf   : > { %v635_v27 = vsel %vm633_vm14, -inf, %v627_v22 }
 0x8d0   : > { %637 = vmax.xlane.f32.xlu0 %v635_v27 }
 0x8d1   : > { %v632_v29 = vpop.xlane.xlu1 %631 }
 0x8d2   : > { %vm634_vm15 = vcmp.ge.f32.partialorder %v628_v24, %v632_v29 }
 0x8d3   : > { %v636_v30 = vsel %vm634_vm15, -inf, %v628_v24 }
 0x8d4   : > { %639 = vmax.xlane.f32.xlu1 %v636_v30 }
 0x959   : > { %v638_v32 = vpop.xlane.xlu0 %637 }
 0x95a   : > { %vm641_vm3 = vcmp.ge.f32.partialorder %v635_v27, %v638_v32 }
 0x95b   : > { %v643_v33 = vsel %vm641_vm3, -inf, %v635_v27 }
 0x95c   : > { %645 = vmax.xlane.f32.xlu0 %v643_v33 }
 0x95d   : > { %v640_v34 = vpop.xlane.xlu1 %639 }
 0x95e   : > { %vm642_vm4 = vcmp.ge.f32.partialorder %v636_v30, %v640_v34 }
 0x95f   : > { %v644_v35 = vsel %vm642_vm4, -inf, %v636_v30 }
 0x960   : > { %647 = vmax.xlane.f32.xlu1 %v644_v35 }
 0x9e5   : > { %v646_v43 = vpop.xlane.xlu0 %645 }
 0x9e6   : > { %vm649_vm5 = vcmp.ge.f32.partialorder %v643_v33, %v646_v43 }
 0x9e7   : > { %v651_v44 = vsel %vm649_vm5, -inf, %v643_v33 }
 0x9e8   : > { %653 = vmax.xlane.f32.xlu0 %v651_v44 }
 0x9e9   : > { %v648_v45 = vpop.xlane.xlu1 %647 }
 0x9ea   : > { %vm650_vm6 = vcmp.ge.f32.partialorder %v644_v35, %v648_v45 }
 0x9eb   : > { %v652_v46 = vsel %vm650_vm6, -inf, %v644_v35 }
 0x9ec   : > { %655 = vmax.xlane.f32.xlu1 %v652_v46 }
 0xa71   : > { %v654_v49 = vpop.xlane.xlu0 %653 }
 0xa72   : > { %vm657_vm7 = vcmp.ge.f32.partialorder %v1622_v28, %v654_v49  ;;  %v1734_v28 = vld [vmem:[%s1827_s6] ss:$0 sm:$0xff] }
 0xa75   : > { %v656_v51 = vpop.xlane.xlu1 %655 }
 0xa76   : > { %vm658_vm8 = vcmp.ge.f32.partialorder %v1626_v31, %v656_v51 }
 0xa77   : > { %vm1266_vm9 = vmpackc.low %vm658_vm8, %vm657_vm7 }
 0xa78   : > { %1365 = vmatmul.mubr.msk.bf16.vlgmr.msra.gmra.mxu0 %vm1266_vm9, %v1267_v52 }
 0xa79   : > { %1389 = vmatpush3.bf16.msra.mxu0 %v1581_v4  ;;  %1396 = vmatprep.mubr.msk.bf16.mxu0 %vm1487_vm0, %v1486_v1  ;;  %v1706_v4 = vld [vmem:[%s1828_s7 + $0x18] sm:$0xff]  }
 0xa7a   : > { %1390 = vmatprep.subr.bf16.mxu0 %v1486_v1  ;;  %1369 = vmatpush3.bf16.msra.mxu1 %v1706_v4 }
 0xa7b   : > { %1370 = vmatprep.subr.bf16.mxu1 %v1486_v1 }
 0xa7d   : > { %1391 = vmatpush3.bf16.msra.mxu0 %v1588_v5  ;;  %v1713_v5 = vld [vmem:[%s1828_s7 + $0x10] sm:$0xff]  }
 0xa7e   : > { %1392 = vmatprep.subr.bf16.mxu0 %v1486_v1  ;;  %1371 = vmatpush3.bf16.msra.mxu1 %v1713_v5 }
 0xa7f   : > { %1372 = vmatprep.subr.bf16.mxu1 %v1486_v1 }
 0xa81   : > { %1393 = vmatpush3.bf16.msra.mxu0 %v1595_v6  ;;  %v1720_v6 = vld [vmem:[%s1828_s7 + $0x8] sm:$0xff]  }
 0xa82   : > { %1394 = vmatprep.subr.bf16.mxu0 %v1486_v1  ;;  %1373 = vmatpush3.bf16.msra.mxu1 %v1720_v6 }
 0xa83   : > { %1374 = vmatprep.subr.bf16.mxu1 %v1486_v1 }
 0xa85   : > { %1395 = vmatpush3.bf16.msra.mxu0 %v1602_v7  ;;  %v1727_v7 = vld [vmem:[%s1828_s7] sm:$0xff]  }
 0xa86   : > { %1420 = vmatprep.subr.bf16.mxu0 %v1486_v1  ;;  %1375 = vmatpush3.bf16.msra.mxu1 %v1727_v7 }
 0xa87   : > { %1380 = vmatprep.subr.bf16.mxu1 %v1486_v1 }
 0xb38   : > { %v752_v31 = vpop.f32.mrf.mxu0 }
 0xb39   : > { %v753_v53 = vadd.f32 %v1734_v28, %v752_v31 }
 0xb3a   : > { %v1366_v54 = vpop.f32.mrf.mxu0 }
 0xb3b   : > { %v761_v55 = vmul.f32 0.70710677, %v753_v53  ;;  %v759_v63 = vmul.f32 0.5, %v753_v53 }
 0xb3c   : > { %v755_v56 = vpop.f32.mrf.mxu0 }
 0xb3d   : > { %1466 = verf.f32 %v761_v55  ;;  %v756_v57 = vadd.f32 %v1734_v28, %v755_v56 }
 0xb3e   : > { %v1367_v58 = vpop.f32.mrf.mxu0 }
 0xb3f   : > { %v762_v59 = vmul.f32 0.70710677, %v756_v57  ;;  %v760_v3 = vmul.f32 0.5, %v756_v57 }
 0xb41   : > { %1468 = verf.f32 %v762_v59 }
 0xb4a   : > { %v1467_v60 = vpop.eup %1466 }
 0xb4b   : > { %v765_v61 = vadd.f32 1.0, %v1467_v60 }
 0xb4d   : > { %v767_v10 = vmul.f32 %v765_v61, %v759_v63 }
 0xb4e   : > { %v1469_v62 = vpop.eup %1468 }
 0xb4f   : > { %v766_v9 = vadd.f32 1.0, %v1469_v62 }
 0xb51   : > { %v768_v11 = vmul.f32 %v766_v9, %v760_v3 }
 0xb53   : > { %v769_v12 = vpack.c.bf16 %v768_v11, %v767_v10 }
 0xb55   : > { %1377 = vmatmul.mubr.msk.bf16.vlgmr.msra.gmra.mxu1 %vm488_vm2, %v769_v12 }
 0xb56   : > { %1381 = vmatpush3.bf16.msra.mxu1 %v1549_v0  ;;  %1384 = vmatprep.mubr.msk.bf16.mxu1 %vm1487_vm0, %v1486_v1  ;;  %v1768_v0 = vld [vmem:[%s1829_s8] ss:$0 sm:$0xff] }
 0xb57   : > { %1382 = vmatprep.subr.bf16.mxu1 %v1486_v1 }
 0xb5a   : > { %1383 = vmatpush3.bf16.msra.mxu1 %v1557_v2 }
 0xb5b   : > { %1400 = vmatprep.subr.bf16.mxu1 %v1486_v1 }
 0xb5d   : > { %1385 = vmatmul.mubr.msk.bf16.vlgmr.msra.gmra.mxu1 %vm402_vm1, %v1461_v13 }
 0xb5e   : > { %1401 = vmatpush3.bf16.msra.mxu1 %v1636_v36  ;;  %1416 = vmatprep.mubr.msk.bf16.mxu1 %vm1487_vm0, %v1486_v1 }
 0xb5f   : > { %1402 = vmatprep.subr.bf16.mxu1 %v1486_v1 }
 0xb62   : > { %1403 = vmatpush3.bf16.msra.mxu1 %v1642_v37 }
 0xb63   : > { %1404 = vmatprep.subr.bf16.mxu1 %v1486_v1 }
 0xb66   : > { %1405 = vmatpush3.bf16.msra.mxu1 %v1649_v38 }
 0xb67   : > { %1406 = vmatprep.subr.bf16.mxu1 %v1486_v1 }
 0xb6a   : > { %1407 = vmatpush3.bf16.msra.mxu1 %v1656_v39 }
 0xb6b   : > { %1408 = vmatprep.subr.bf16.mxu1 %v1486_v1 }
 0xb6e   : > { %1409 = vmatpush3.bf16.msra.mxu1 %v1663_v40 }
 0xb6f   : > { %1410 = vmatprep.subr.bf16.mxu1 %v1486_v1 }
 0xb72   : > { %1411 = vmatpush3.bf16.msra.mxu1 %v1670_v41 }
 0xb73   : > { %1412 = vmatprep.subr.bf16.mxu1 %v1486_v1 }
 0xb76   : > { %1413 = vmatpush3.bf16.msra.mxu1 %v1677_v42 }
 0xb77   : > { %1414 = vmatprep.subr.bf16.mxu1 %v1486_v1 }
 0xb7a   : > { %1415 = vmatpush3.bf16.msra.mxu1 %v1685_v47 }
 0xc15   : > { %v837_v2 = vpop.f32.mrf.mxu1 }
 0xc16   : > { %v838_v14 = vadd.f32 %v1768_v0, %v837_v2 }
 0xc17   : > { %v1378_v15 = vpop.f32.mrf.mxu1 }
 0xc18   : > { %844 = vst.msk [vmem:[%s1773_s26] sm:$0xff] %vm402_vm1, %v838_v14 }
 0xc19   : > { %v840_v16 = vpop.f32.mrf.mxu1 }
 0xc1a   : > { %v841_v17 = vadd.f32 %v1768_v0, %v840_v16 }
 0xc1b   : > { %v1379_v18 = vpop.f32.mrf.mxu1 }
 0xc1c   : > { %845 = vst.msk [vmem:[%s1773_s26 + $0x8] sm:$0xff] %vm402_vm1, %v841_v17 }
 0xc1d   : > { %v890_v19 = vpop.f32.mrf.mxu1 }
 0xc1e   : > { %v891_v20 = vadd.f32 %v1609_v8, %v890_v19 }
 0xc1f   : > { %v1386_v21 = vpop.f32.mrf.mxu1 }
 0xc20   : > { %v899_v22 = vmul.f32 0.70710677, %v891_v20  ;;  %v897_v33 = vmul.f32 0.5, %v891_v20 }
 0xc21   : > { %v893_v23 = vpop.f32.mrf.mxu1 }
 0xc22   : > { %1470 = verf.f32 %v899_v22  ;;  %v894_v24 = vadd.f32 %v1609_v8, %v893_v23 }
 0xc23   : > { %v1387_v25 = vpop.f32.mrf.mxu1 }
 0xc24   : > { %v900_v27 = vmul.f32 0.70710677, %v894_v24  ;;  %v898_v34 = vmul.f32 0.5, %v894_v24 }
 0xc26   : > { %1472 = verf.f32 %v900_v27 }
 0xc2f   : > { %v1471_v29 = vpop.eup %1470 }
 0xc30   : > { %v903_v30 = vadd.f32 1.0, %v1471_v29 }
 0xc32   : > { %v905_v36 = vmul.f32 %v903_v30, %v897_v33 }
 0xc33   : > { %v1473_v32 = vpop.eup %1472 }
 0xc34   : > { %v904_v35 = vadd.f32 1.0, %v1473_v32 }
 0xc36   : > { %v906_v37 = vmul.f32 %v904_v35, %v898_v34 }
 0xc38   : > { %v907_v38 = vpack.c.bf16 %v906_v37, %v905_v36 }
 0xc3a   : > { %1397 = vmatmul.mubr.msk.bf16.vlgmr.msra.gmra.mxu0 %vm488_vm2, %v907_v38 }
 0xc3b   : > { %1421 = vmatpush3.bf16.msra.mxu0 %v1706_v4  ;;  %1428 = vmatprep.mubr.msk.bf16.mxu0 %vm1487_vm0, %v1486_v1 }
 0xc3c   : > { %1422 = vmatprep.subr.bf16.mxu0 %v1486_v1 }
 0xc3f   : > { %1423 = vmatpush3.bf16.msra.mxu0 %v1713_v5 }
 0xc40   : > { %1424 = vmatprep.subr.bf16.mxu0 %v1486_v1 }
 0xc43   : > { %1425 = vmatpush3.bf16.msra.mxu0 %v1720_v6 }
 0xc44   : > { %1426 = vmatprep.subr.bf16.mxu0 %v1486_v1 }
 0xc47   : > { %1427 = vmatpush3.bf16.msra.mxu0 %v1727_v7 }
 0xcfa   : > { %v945_v8 = vpop.f32.mrf.mxu0 }
 0xcfb   : > { %v1794_v39 = vadd.f32 %v1619_v26, %v945_v8 }
 0xcfc   : > { %v1398_v40 = vpop.f32.mrf.mxu0 }
 0xcfd   : > { %952 = vmax.xlane.f32.xlu0 %v1794_v39 }
 0xcfe   : > { %v948_v41 = vpop.f32.mrf.mxu0 }
 0xcff   : > { %v1798_v42 = vadd.f32 %v1619_v26, %v948_v41 }
 0xd00   : > { %v1399_v43 = vpop.f32.mrf.mxu0 }
 0xd01   : > { %954 = vmax.xlane.f32.xlu1 %v1798_v42 }
 0xd86   : > { %v953_v44 = vpop.xlane.xlu0 %952 }
 0xd87   : > { %vm956_vm0 = vcmp.ge.f32.partialorder %v1794_v39, %v953_v44  ;;  %v1079_v44 = vmax.f32 %v1798_v42, 0.0 }
 0xd88   : > { %v958_v1 = vsel %vm956_vm0, -inf, %v1794_v39 }
 0xd89   : > { %960 = vmax.xlane.f32.xlu0 %v958_v1 }
 0xd8a   : > { %v955_v45 = vpop.xlane.xlu1 %954 }
 0xd8b   : > { %vm957_vm10 = vcmp.ge.f32.partialorder %v1798_v42, %v955_v45  ;;  %v1078_v45 = vmax.f32 %v1794_v39, 0.0 }
 0xd8c   : > { %v959_v46 = vsel %vm957_vm10, -inf, %v1798_v42 }
 0xd8d   : > { %962 = vmax.xlane.f32.xlu1 %v959_v46 }
 0xe12   : > { %v961_v47 = vpop.xlane.xlu0 %960 }
 0xe13   : > { %vm964_vm11 = vcmp.ge.f32.partialorder %v958_v1, %v961_v47  ;;  %v1279_v47 = vpack.c.bf16 %v1079_v44, %v1078_v45 }
 0xe14   : > { %v966_v48 = vsel %vm964_vm11, -inf, %v958_v1 }
 0xe15   : > { %968 = vmax.xlane.f32.xlu0 %v966_v48 }
 0xe16   : > { %v963_v26 = vpop.xlane.xlu1 %962 }
 0xe17   : > { %vm965_vm12 = vcmp.ge.f32.partialorder %v959_v46, %v963_v26 }
 0xe18   : > { %v967_v49 = vsel %vm965_vm12, -inf, %v959_v46 }
 0xe19   : > { %970 = vmax.xlane.f32.xlu1 %v967_v49 }
 0xe9e   : > { %v969_v50 = vpop.xlane.xlu0 %968 }
 0xe9f   : > { %vm972_vm13 = vcmp.ge.f32.partialorder %v966_v48, %v969_v50 }
 0xea0   : > { %v974_v51 = vsel %vm972_vm13, -inf, %v966_v48 }
 0xea1   : > { %976 = vmax.xlane.f32.xlu0 %v974_v51 }
 0xea2   : > { %v971_v52 = vpop.xlane.xlu1 %970 }
 0xea3   : > { %vm973_vm14 = vcmp.ge.f32.partialorder %v967_v49, %v971_v52 }
 0xea4   : > { %v975_v4 = vsel %vm973_vm14, -inf, %v967_v49 }
 0xea5   : > { %978 = vmax.xlane.f32.xlu1 %v975_v4 }
 0xf2a   : > { %v977_v5 = vpop.xlane.xlu0 %976 }
 0xf2b   : > { %vm980_vm15 = vcmp.ge.f32.partialorder %v974_v51, %v977_v5 }
 0xf2c   : > { %v982_v6 = vsel %vm980_vm15, -inf, %v974_v51 }
 0xf2d   : > { %984 = vmax.xlane.f32.xlu0 %v982_v6 }
 0xf2e   : > { %v979_v7 = vpop.xlane.xlu1 %978 }
 0xf2f   : > { %vm981_vm3 = vcmp.ge.f32.partialorder %v975_v4, %v979_v7 }
 0xf30   : > { %v983_v31 = vsel %vm981_vm3, -inf, %v975_v4 }
 0xf31   : > { %986 = vmax.xlane.f32.xlu1 %v983_v31 }
 0xfb6   : > { %v985_v53 = vpop.xlane.xlu0 %984 }
 0xfb7   : > { %vm988_vm4 = vcmp.ge.f32.partialorder %v982_v6, %v985_v53 }
 0xfb8   : > { %v990_v54 = vsel %vm988_vm4, -inf, %v982_v6 }
 0xfb9   : > { %992 = vmax.xlane.f32.xlu0 %v990_v54 }
 0xfba   : > { %v987_v55 = vpop.xlane.xlu1 %986 }
 0xfbb   : > { %vm989_vm5 = vcmp.ge.f32.partialorder %v983_v31, %v987_v55 }
 0xfbc   : > { %v991_v56 = vsel %vm989_vm5, -inf, %v983_v31 }
 0xfbd   : > { %994 = vmax.xlane.f32.xlu1 %v991_v56 }
0x1042   : > { %v993_v57 = vpop.xlane.xlu0 %992 }
0x1043   : > { %vm996_vm6 = vcmp.ge.f32.partialorder %v990_v54, %v993_v57 }
0x1044   : > { %v998_v58 = vsel %vm996_vm6, -inf, %v990_v54 }
0x1045   : > { %1000 = vmax.xlane.f32.xlu0 %v998_v58 }
0x1046   : > { %v995_v59 = vpop.xlane.xlu1 %994 }
0x1047   : > { %vm997_vm7 = vcmp.ge.f32.partialorder %v991_v56, %v995_v59 }
0x1048   : > { %v999_v60 = vsel %vm997_vm7, -inf, %v991_v56 }
0x1049   : > { %1002 = vmax.xlane.f32.xlu1 %v999_v60 }
0x10ce   : > { %v1001_v61 = vpop.xlane.xlu0 %1000 }
0x10cf   : > { %vm1004_vm8 = vcmp.ge.f32.partialorder %v998_v58, %v1001_v61 }
0x10d0   : > { %v1006_v62 = vsel %vm1004_vm8, -inf, %v998_v58 }
0x10d1   : > { %1008 = vmax.xlane.f32.xlu0 %v1006_v62 }
0x10d2   : > { %v1003_v63 = vpop.xlane.xlu1 %1002 }
0x10d3   : > { %vm1005_vm9 = vcmp.ge.f32.partialorder %v999_v60, %v1003_v63 }
0x10d4   : > { %v1007_v3 = vsel %vm1005_vm9, -inf, %v999_v60 }
0x10d5   : > { %1010 = vmax.xlane.f32.xlu1 %v1007_v3 }
0x115a   : > { %v1009_v9 = vpop.xlane.xlu0 %1008 }
0x115b   : > { %vm1012_vm0 = vcmp.ge.f32.partialorder %v1006_v62, %v1009_v9 }
0x115c   : > { %v1014_v10 = vsel %vm1012_vm0, -inf, %v1006_v62 }
0x115d   : > { %1016 = vmax.xlane.f32.xlu0 %v1014_v10 }
0x115e   : > { %v1011_v11 = vpop.xlane.xlu1 %1010 }
0x115f   : > { %vm1013_vm10 = vcmp.ge.f32.partialorder %v1007_v3, %v1011_v11 }
0x1160   : > { %v1015_v12 = vsel %vm1013_vm10, -inf, %v1007_v3 }
0x1161   : > { %1018 = vmax.xlane.f32.xlu1 %v1015_v12 }
0x11e6   : > { %v1017_v13 = vpop.xlane.xlu0 %1016 }
0x11e7   : > { %vm1020_vm11 = vcmp.ge.f32.partialorder %v1014_v10, %v1017_v13 }
0x11e8   : > { %v1022_v2 = vsel %vm1020_vm11, -inf, %v1014_v10 }
0x11e9   : > { %1024 = vmax.xlane.f32.xlu0 %v1022_v2 }
0x11ea   : > { %v1019_v14 = vpop.xlane.xlu1 %1018 }
0x11eb   : > { %vm1021_vm12 = vcmp.ge.f32.partialorder %v1015_v12, %v1019_v14 }
0x11ec   : > { %v1023_v15 = vsel %vm1021_vm12, -inf, %v1015_v12 }
0x11ed   : > { %1026 = vmax.xlane.f32.xlu1 %v1023_v15 }
0x1272   : > { %v1025_v16 = vpop.xlane.xlu0 %1024 }
0x1273   : > { %vm1028_vm13 = vcmp.ge.f32.partialorder %v1022_v2, %v1025_v16 }
0x1274   : > { %v1030_v17 = vsel %vm1028_vm13, -inf, %v1022_v2 }
0x1275   : > { %1032 = vmax.xlane.f32.xlu0 %v1030_v17 }
0x1276   : > { %v1027_v18 = vpop.xlane.xlu1 %1026 }
0x1277   : > { %vm1029_vm14 = vcmp.ge.f32.partialorder %v1023_v15, %v1027_v18 }
0x1278   : > { %v1031_v19 = vsel %vm1029_vm14, -inf, %v1023_v15 }
0x1279   : > { %1034 = vmax.xlane.f32.xlu1 %v1031_v19 }
0x12fe   : > { %v1033_v20 = vpop.xlane.xlu0 %1032 }
0x12ff   : > { %vm1036_vm15 = vcmp.ge.f32.partialorder %v1030_v17, %v1033_v20 }
0x1300   : > { %v1038_v21 = vsel %vm1036_vm15, -inf, %v1030_v17 }
0x1301   : > { %1040 = vmax.xlane.f32.xlu0 %v1038_v21 }
0x1302   : > { %v1035_v22 = vpop.xlane.xlu1 %1034 }
0x1303   : > { %vm1037_vm3 = vcmp.ge.f32.partialorder %v1031_v19, %v1035_v22 }
0x1304   : > { %v1039_v23 = vsel %vm1037_vm3, -inf, %v1031_v19 }
0x1305   : > { %1042 = vmax.xlane.f32.xlu1 %v1039_v23 }
0x138a   : > { %v1041_v24 = vpop.xlane.xlu0 %1040 }
0x138b   : > { %vm1044_vm4 = vcmp.ge.f32.partialorder %v1038_v21, %v1041_v24 }
0x138c   : > { %v1046_v25 = vsel %vm1044_vm4, -inf, %v1038_v21 }
0x138d   : > { %1048 = vmax.xlane.f32.xlu0 %v1046_v25 }
0x138e   : > { %v1043_v27 = vpop.xlane.xlu1 %1042 }
0x138f   : > { %vm1045_vm5 = vcmp.ge.f32.partialorder %v1039_v23, %v1043_v27 }
0x1390   : > { %v1047_v29 = vsel %vm1045_vm5, -inf, %v1039_v23 }
0x1391   : > { %1050 = vmax.xlane.f32.xlu1 %v1047_v29 }
0x1416   : > { %v1049_v30 = vpop.xlane.xlu0 %1048 }
0x1417   : > { %vm1052_vm6 = vcmp.ge.f32.partialorder %v1046_v25, %v1049_v30 }
0x1418   : > { %v1054_v32 = vsel %vm1052_vm6, -inf, %v1046_v25 }
0x1419   : > { %1056 = vmax.xlane.f32.xlu0 %v1054_v32 }
0x141a   : > { %v1051_v33 = vpop.xlane.xlu1 %1050 }
0x141b   : > { %vm1053_vm7 = vcmp.ge.f32.partialorder %v1047_v29, %v1051_v33 }
0x141c   : > { %v1055_v34 = vsel %vm1053_vm7, -inf, %v1047_v29 }
0x141d   : > { %1058 = vmax.xlane.f32.xlu1 %v1055_v34 }
0x14a2   : > { %v1057_v35 = vpop.xlane.xlu0 %1056 }
0x14a3   : > { %vm1060_vm8 = vcmp.ge.f32.partialorder %v1054_v32, %v1057_v35 }
0x14a4   : > { %v1062_v36 = vsel %vm1060_vm8, -inf, %v1054_v32 }
0x14a5   : > { %1064 = vmax.xlane.f32.xlu0 %v1062_v36 }
0x14a6   : > { %v1059_v37 = vpop.xlane.xlu1 %1058 }
0x14a7   : > { %vm1061_vm9 = vcmp.ge.f32.partialorder %v1055_v34, %v1059_v37 }
0x14a8   : > { %v1063_v38 = vsel %vm1061_vm9, -inf, %v1055_v34 }
0x14a9   : > { %1066 = vmax.xlane.f32.xlu1 %v1063_v38 }
0x152e   : > { %v1065_v8 = vpop.xlane.xlu0 %1064 }
0x152f   : > { %vm1068_vm0 = vcmp.ge.f32.partialorder %v1062_v36, %v1065_v8 }
0x1530   : > { %v1070_v40 = vsel %vm1068_vm0, -inf, %v1062_v36 }
0x1531   : > { %1072 = vmax.xlane.f32.xlu0 %v1070_v40 }
0x1532   : > { %v1067_v41 = vpop.xlane.xlu1 %1066 }
0x1533   : > { %vm1069_vm10 = vcmp.ge.f32.partialorder %v1063_v38, %v1067_v41 }
0x1534   : > { %v1071_v43 = vsel %vm1069_vm10, -inf, %v1063_v38 }
0x1535   : > { %1074 = vmax.xlane.f32.xlu1 %v1071_v43 }
0x15ba   : > { %v1073_v1 = vpop.xlane.xlu0 %1072 }
0x15bb   : > { %vm1076_vm11 = vcmp.ge.f32.partialorder %v1794_v39, %v1073_v1 }
0x15be   : > { %v1075_v46 = vpop.xlane.xlu1 %1074 }
0x15bf   : > { %vm1077_vm12 = vcmp.ge.f32.partialorder %v1798_v42, %v1075_v46 }
0x15c0   : > { %vm1278_vm13 = vmpackc.low %vm1077_vm12, %vm1076_vm11 }
0x15c1   : > { %1417 = vmatmul.mubr.msk.bf16.vlgmr.msra.gmra.mxu1 %vm1278_vm13, %v1279_v47 }
0x1681   : > { %v1117_v48 = vpop.f32.mrf.mxu1 }
0x1682   : > { %v1118_v26 = vadd.f32 %v1734_v28, %v1117_v48 }
0x1683   : > { %v1418_v49 = vpop.f32.mrf.mxu1 }
0x1684   : > { %v1126_v50 = vmul.f32 0.70710677, %v1118_v26  ;;  %v1124_v7 = vmul.f32 0.5, %v1118_v26 }
0x1685   : > { %v1120_v51 = vpop.f32.mrf.mxu1 }
0x1686   : > { %1474 = verf.f32 %v1126_v50  ;;  %v1121_v52 = vadd.f32 %v1734_v28, %v1120_v51 }
0x1687   : > { %v1419_v4 = vpop.f32.mrf.mxu1 }
0x1688   : > { %v1127_v5 = vmul.f32 0.70710677, %v1121_v52  ;;  %v1125_v31 = vmul.f32 0.5, %v1121_v52 }
0x168a   : > { %1476 = verf.f32 %v1127_v5 }
0x1693   : > { %v1475_v6 = vpop.eup %1474 }
0x1694   : > { %v1130_v39 = vadd.f32 1.0, %v1475_v6 }
0x1696   : > { %v1132_v54 = vmul.f32 %v1130_v39, %v1124_v7 }
0x1697   : > { %v1477_v42 = vpop.eup %1476 }
0x1698   : > { %v1131_v53 = vadd.f32 1.0, %v1477_v42 }
0x169a   : > { %v1133_v55 = vmul.f32 %v1131_v53, %v1125_v31 }
0x169c   : > { %v1134_v56 = vpack.c.bf16 %v1133_v55, %v1132_v54 }
0x169e   : > { %1429 = vmatmul.mubr.msk.bf16.vlgmr.msra.gmra.mxu0 %vm488_vm2, %v1134_v56 }
0x175e   : > { %v1172_v57 = vpop.f32.mrf.mxu0 }
0x175f   : > { %v1173_v58 = vadd.f32 %v1768_v0, %v1172_v57 }
0x1760   : > { %v1430_v28 = vpop.f32.mrf.mxu0 }
0x1761   : > { %1179 = vst.msk [vmem:[%s1773_s26 + $0x10] sm:$0xff] %vm402_vm1, %v1173_v58 }
0x1762   : > { %v1175_v59 = vpop.f32.mrf.mxu0 }
0x1763   : > { %v1176_v60 = vadd.f32 %v1768_v0, %v1175_v59 }
0x1764   : > { %v1431_v61 = vpop.f32.mrf.mxu0 }
0x1765   : > { %1180 = vst.msk [vmem:[%s1773_s26 + $0x18] sm:$0xff] %vm402_vm1, %v1176_v60 }
0x1766 PF: > { %s19_s30 = sadd.s32 1, %s1484_s30  }
0x1767   : > { %p16_p4 = scmp.ge.s32.totalorder %s19_s30, 4  }
0x1769   :  { %18 = sbr.rel (!%p16_p4) target bundleno = 1 (0x1), region = 86 }

</bundles_post_ra>
